<compile_context>
chip_gen: v6e
topology: v6e:2x2x1
jax: 0.10.0
libtpu: 0.0.40
codegen_flags: <defaults>
</compile_context>

<pallas_src>
import jax
import jax.numpy as jnp
from jax.experimental import pallas as pl
from jax.experimental.pallas import tpu as pltpu


def conv1x1_bn_relu_kernel(x_ref, w_ref, scale_ref, bias_ref, o_ref):
    # x_ref:     (1, Cin, TL)   one image's spatial tile, channels on sublanes
    # w_ref:     (Cout, Cin)    1x1 conv weight
    # scale_ref: (Cout, 1)      folded BN scale = gamma / sqrt(var + eps)
    # bias_ref:  (Cout, 1)      folded bias     = (conv_bias - mean) * scale + beta
    # o_ref:     (1, Cout, TL)  lane-dense output tile (TL multiple of 128 when possible)
    acc = jnp.dot(w_ref[...], x_ref[0],
                  preferred_element_type=jnp.float32)          # (Cout, TL), f32 acc on MXU
    y = acc * scale_ref[...] + bias_ref[...]                   # fused BN (VPU, co-issues)
    y = jnp.maximum(y, 0.0)                                    # ReLU
    o_ref[...] = y[None].astype(o_ref.dtype)                   # single lane-dense store


def _pick_lane_tile(L, N, max_tl=2048, min_steps=8):
    """Largest 128-multiple tile dividing L, preferring >= min_steps total grid steps."""
    cands = [t for t in range(128, min(L, max_tl) + 1, 128) if L % t == 0]
    if not cands:
        return L                       # tiny / odd spatial size: single full-width tile
    for t in sorted(cands, reverse=True):
        if N * (L // t) >= min_steps:
            return t
    return min(cands)                  # not much work anyway; smallest aligned tile


def conv_1x1(x_nchw, weight, conv_bias, gamma, beta, running_mean, running_var, eps=1e-5):
    """Forward of Conv_1x1: Conv2d(k=1, bias) -> BatchNorm2d (eval) -> ReLU.

    x_nchw: (N, Cin, H, W) -> (N, Cout, H, W). Stays NCHW end-to-end (no transposes).
    """
    N, Cin, H, W = x_nchw.shape
    Cout = weight.shape[0]
    L = H * W

    # Free reshapes of contiguous trailing dims only — no extra HBM passes.
    x2 = x_nchw.reshape(N, Cin, L)
    w2 = weight.reshape(Cout, Cin).astype(x_nchw.dtype)

    # Fold conv bias + inference BatchNorm into one per-channel scale/bias.
    scale = (gamma / jnp.sqrt(running_var + eps)).astype(jnp.float32)
    bias = ((conv_bias - running_mean) * scale + beta).astype(jnp.float32)
    scale = scale.reshape(Cout, 1)
    bias = bias.reshape(Cout, 1)

    tl = _pick_lane_tile(L, N)
    grid = (N, L // tl)

    itemsize = x_nchw.dtype.itemsize
    cost = pl.CostEstimate(
        flops=2 * N * L * Cin * Cout,
        transcendentals=0,
        bytes_accessed=(N * Cin * L * itemsize          # input
                        + Cout * Cin * itemsize         # weight
                        + 2 * Cout * 4                  # scale/bias
                        + N * Cout * L * itemsize),     # output
    )

    out = pl.pallas_call(
        conv1x1_bn_relu_kernel,
        out_shape=jax.ShapeDtypeStruct((N, Cout, L), x_nchw.dtype),
        grid_spec=pltpu.PrefetchScalarGridSpec(
            num_scalar_prefetch=0,
            grid=grid,
            in_specs=[
                pl.BlockSpec((1, Cin, tl), lambda n, l: (n, 0, l)),
                pl.BlockSpec((Cout, Cin), lambda n, l: (0, 0)),
                pl.BlockSpec((Cout, 1), lambda n, l: (0, 0)),
                pl.BlockSpec((Cout, 1), lambda n, l: (0, 0)),
            ],
            out_specs=pl.BlockSpec((1, Cout, tl), lambda n, l: (n, 0, l)),
        ),
        compiler_params=pltpu.CompilerParams(
            dimension_semantics=("parallel", "parallel"),
            vmem_limit_bytes=32 * 1024 * 1024,
        ),
        cost_estimate=cost,
    )(x2, w2, scale, bias)

    return out.reshape(N, Cout, H, W)


def reference(x_nchw, weight, conv_bias, gamma, beta, running_mean, running_var, eps=1e-5):
    y = jax.lax.conv_general_dilated(
        x_nchw, weight, window_strides=(1, 1), padding=((0, 0), (0, 0)),
        dimension_numbers=("NCHW", "OIHW", "NCHW"))
    y = y + conv_bias[None, :, None, None]
    scale = gamma / jnp.sqrt(running_var + eps)
    bias = beta - running_mean * scale
    y = y * scale[None, :, None, None] + bias[None, :, None, None]
    return jnp.maximum(y, 0.0)


if __name__ == "__main__":
    key = jax.random.PRNGKey(0)
    N, Cin, Cout, H, W = 2, 4, 8, 16, 16

    k_x, k_w, k_b = jax.random.split(key, 3)
    x = jax.random.normal(k_x, (N, Cin, H, W), dtype=jnp.float32)
    # Deterministic synthetic params (no checkpoint load).
    weight = 0.1 * jax.random.normal(k_w, (Cout, Cin, 1, 1), dtype=jnp.float32)
    conv_bias = 0.1 * jax.random.normal(k_b, (Cout,), dtype=jnp.float32)
    # PyTorch BatchNorm2d default init; BN applied with inference-mode running stats.
    gamma = jnp.ones((Cout,), jnp.float32)
    beta = jnp.zeros((Cout,), jnp.float32)
    running_mean = jnp.zeros((Cout,), jnp.float32)
    running_var = jnp.ones((Cout,), jnp.float32)

    out = conv_1x1(x, weight, conv_bias, gamma, beta, running_mean, running_var)
    out = jax.block_until_ready(out)

    ref = reference(x, weight, conv_bias, gamma, beta, running_mean, running_var)
    assert out.shape == (N, Cout, H, W)
    assert jnp.allclose(out, ref, atol=1e-4, rtol=1e-4), "mismatch vs reference"
    print("KERNEL_OK")
</pallas_src>

<mosaic_0001>
module attributes {stable_mosaic.version = 11 : i64} {
  func.func @conv1x1_bn_relu_kernel(%arg0: i32, %arg1: i32, %arg2: memref<1x4x128xf32, #tpu.memory_space<vmem>>, %arg3: memref<8x4xf32, #tpu.memory_space<vmem>>, %arg4: memref<8x1xf32, #tpu.memory_space<vmem>>, %arg5: memref<8x1xf32, #tpu.memory_space<vmem>>, %arg6: memref<1x8x128xf32, #tpu.memory_space<vmem>>) attributes {dimension_semantics = [#tpu.dimension_semantics<parallel>, #tpu.dimension_semantics<parallel>], iteration_bounds = array<i64: 2, 2>, scalar_prefetch = 0 : i64, scratch_operands = 0 : i64, tpu.core_type = #tpu.core_type<tc>, window_params = [{transform_indices = @transform_0, window_bounds = array<i64: 1, 4, 128>}, {pipeline_mode = #tpu.pipeline_mode<synchronous>, transform_indices = @transform_1, window_bounds = array<i64: 8, 4>}, {pipeline_mode = #tpu.pipeline_mode<synchronous>, transform_indices = @transform_2, window_bounds = array<i64: 8, 1>}, {pipeline_mode = #tpu.pipeline_mode<synchronous>, transform_indices = @transform_3, window_bounds = array<i64: 8, 1>}, {transform_indices = @transform_4, window_bounds = array<i64: 1, 8, 128>}]} {
    %c0 = arith.constant 0 : index
    %c0_0 = arith.constant 0 : index
    %0 = vector.load %arg3[%c0, %c0_0] : memref<8x4xf32, #tpu.memory_space<vmem>>, vector<8x4xf32>
    %c0_1 = arith.constant 0 : index
    %c0_2 = arith.constant 0 : index
    %c0_3 = arith.constant 0 : index
    %1 = vector.load %arg2[%c0_1, %c0_2, %c0_3] : memref<1x4x128xf32, #tpu.memory_space<vmem>>, vector<1x4x128xf32>
    %2 = vector.shape_cast %1 : vector<1x4x128xf32> to vector<4x128xf32>
    %cst = arith.constant dense<0.000000e+00> : vector<8x128xf32>
    %3 = tpu.matmul %0, %2, %cst {dimension_numbers = #tpu.dot_dimension_numbers<[1], [0], [0], [1], [0, 0, 1, 1], [], []>} : vector<8x4xf32>, vector<4x128xf32>, vector<8x128xf32> -> vector<8x128xf32>
    %c0_4 = arith.constant 0 : index
    %c0_5 = arith.constant 0 : index
    %4 = vector.load %arg4[%c0_4, %c0_5] : memref<8x1xf32, #tpu.memory_space<vmem>>, vector<8x1xf32>
    %5 = vector.broadcast %4 : vector<8x1xf32> to vector<8x128xf32>
    %6 = arith.mulf %3, %5 : vector<8x128xf32>
    %c0_6 = arith.constant 0 : index
    %c0_7 = arith.constant 0 : index
    %7 = vector.load %arg5[%c0_6, %c0_7] : memref<8x1xf32, #tpu.memory_space<vmem>>, vector<8x1xf32>
    %8 = vector.broadcast %7 : vector<8x1xf32> to vector<8x128xf32>
    %9 = arith.addf %6, %8 : vector<8x128xf32>
    %cst_8 = arith.constant 0.000000e+00 : f32
    %10 = vector.broadcast %cst_8 : f32 to vector<8x128xf32>
    %11 = arith.maximumf %9, %10 : vector<8x128xf32>
    %12 = vector.shape_cast %11 : vector<8x128xf32> to vector<1x8x128xf32>
    %c0_9 = arith.constant 0 : index
    %c0_10 = arith.constant 0 : index
    %c0_11 = arith.constant 0 : index
    %13 = vector.load %arg6[%c0_9, %c0_10, %c0_11] : memref<1x8x128xf32, #tpu.memory_space<vmem>>, vector<1x8x128xf32>
    tpu.vector_store %arg6[%c0_9, %c0_10, %c0_11], %12 {strides = array<i32>} : memref<1x8x128xf32, #tpu.memory_space<vmem>>, vector<1x8x128xf32>,
    return
  }
  func.func @transform_0(%arg0: i32, %arg1: i32) -> (i32, i32, i32) {
    %c0_i32 = arith.constant 0 : i32
    %c0_i32_0 = arith.constant 0 : i32
    return %arg0, %c0_i32, %arg1 : i32, i32, i32
  }
  func.func @transform_1(%arg0: i32, %arg1: i32) -> (i32, i32) {
    %c0_i32 = arith.constant 0 : i32
    %c0_i32_0 = arith.constant 0 : i32
    %c0_i32_1 = arith.constant 0 : i32
    return %c0_i32, %c0_i32_0 : i32, i32
  }
  func.func @transform_2(%arg0: i32, %arg1: i32) -> (i32, i32) {
    %c0_i32 = arith.constant 0 : i32
    %c0_i32_0 = arith.constant 0 : i32
    %c0_i32_1 = arith.constant 0 : i32
    return %c0_i32, %c0_i32_0 : i32, i32
  }
  func.func @transform_3(%arg0: i32, %arg1: i32) -> (i32, i32) {
    %c0_i32 = arith.constant 0 : i32
    %c0_i32_0 = arith.constant 0 : i32
    %c0_i32_1 = arith.constant 0 : i32
    return %c0_i32, %c0_i32_0 : i32, i32
  }
  func.func @transform_4(%arg0: i32, %arg1: i32) -> (i32, i32, i32) {
    %c0_i32 = arith.constant 0 : i32
    %c0_i32_0 = arith.constant 0 : i32
    return %arg0, %c0_i32, %arg1 : i32, i32, i32
  }
}

</mosaic_0001>

<bundles_post_ra>
// kernel: tpu_custom_call.1
= control target key start
LH: loop header
LB: loop body
LE: loop exit
PB: predicated region body
PF: predicated region fallthrough
CT: control target
= control target key end

     0   :  { %9 = vsyncpa [#allocation3], 0  ;;  %s764_s0 = inlined_call_operand.vmem [shape: f32[2,4,256], index: 0, kind: input, shape index: {}]   ;;  %s765_s1 = inlined_call_operand.vmem [shape: f32[8,4], index: 1, kind: input, shape index: {}]   ;;  %s766_s2 = inlined_call_operand.vmem [shape: f32[8,1], index: 2, kind: input, shape index: {}]   ;;  %s767_s3 = inlined_call_operand.vmem [shape: f32[8,1], index: 3, kind: input, shape index: {}]   ;;  %s768_s4 = inlined_call_operand.hbm [shape: f32[2,8,256], index: 4, kind: output, shape index: {}]  }
   0x1   :  { %11 = vsyncpa [#allocation3 + $0x1], 0  ;;  %s631_s15 = smov 0   ;;  %s633_s16 = smov 0  }
   0x2   :  { %s635_s17 = smov 0   ;;  %s637_s18 = smov 0  }
   0x3   :  { %s639_s19 = smov 0   ;;  %s641_s20 = smov 0  }
   0x4   :  { %s643_s21 = smov 0   ;;  %s645_s22 = smov 0  }
   0x5 LB: > { %s411_s23 = sadd.s32 4294967295, %s600_s22   ;;  %s412_s24 = sadd.s32 4294967294, %s600_s22   ;;  %s600_s22 = sphi %s645_s22, %s17_s22   ;;  %s596_s21 = sphi %s643_s21, %s777_s21   ;;  %s592_s20 = sphi %s641_s20, %s776_s20   ;;  %s588_s19 = sphi %s639_s19, %s775_s19   ;;  %s584_s18 = sphi %s637_s18, %s774_s18   ;;  %s580_s17 = sphi %s635_s17, %s773_s17   ;;  %s576_s16 = sphi %s633_s16, %s772_s16   ;;  %s572_s15 = sphi %s631_s15, %s771_s15  }
   0x6   : > { %s26_s25 = sadd.s32 1, %s592_s20  ;;  %s29_s26 = sadd.s32 1, %s596_s21 }
   0x7   : > { %p27_p0 = scmp.ge.s32.totalorder %s26_s25, 2  ;;  %p139_p1 = scmp.ne.s32.totalorder %s580_s17, %s576_s16 }
   0x8   : > { %p140_p2 = scmp.eq.s32.totalorder %s411_s23, 3  ;;  %p145_p5 = scmp.ne.s32.totalorder %s576_s16, %s572_s15 }
   0x9   : > { %s779_s25 = smov (%p27_p0, %s26_s25), 0  ;;  %s781_s26 = smov (!%p27_p0, %s29_s26), %s596_s21 }
   0xa   : > { %s125_s27 = ssub.s32 %s592_s20, %s779_s25  ;;  %p682_p3 = por %p140_p2, %p139_p1 }
   0xb   : > { %p31_p4 = scmp.ge.s32.totalorder %s781_s26, 2  ;;  %p146_p6 = scmp.eq.s32.totalorder %s412_s24, 3 }
   0xc   : > { %p415_p7 = scmp.ge.s32.totalorder %s600_s22, 1  ;;  %p184_p9 = scmp.lt.s32.totalorder %s600_s22, 5 }
   0xd   : > { %s783_s26 = smov (%p31_p4, %s781_s26), 0  ;;  %p691_p8 = por %p146_p6, %p145_p5 }
   0xe   : > { %s124_s30 = ssub.s32 %s596_s21, %s783_s26  ;;  %s129_s5 = sadd.s32 1, %s580_s17 }
   0xf   : > { %s126_s6 = sor.u32 %s125_s27, %s124_s30  ;;  %p185_p10 = pnand %p415_p7, %p184_p9 }
  0x10   : > { %p127_p11 = scmp.eq.s32.totalorder %s126_s6, 0  ;;  %p213_p12 = scmp.lt.s32.totalorder (!%p185_p10), %s588_s19, 1 }
  0x11   : > { %188 = sbr.rel (%p185_p10) target bundleno = 242 (0xf2), region = 36  ;;  %p215_p13 = scmp.lt.s32.totalorder (!%p185_p10), %s584_s18, 1 }
  0x12   : > { %s700_s7 = scalar_select %p127_p11, %s580_s17, %s129_s5  }
  0x13   : > { %s210_s9 = sand.u32 (!%p185_p10), 1, %s576_s16   ;;  %s422_s13 = sshll.u32 (!%p185_p10), %s588_s19, 1 }
  0x16   : > { %v602_v0 = vmov 0.0   ;;  %vm603_vm0 = vmmov 0   ;;  %v301_v1 = vld [vmem:[%s766_s2] sm:$0xff]  ;;  %s214_s10 = scalar_select %p213_p12, %s588_s19, 1  ;;  %v604_v2 = vmov 0   ;;  %vm227_vm1 = vcmask 1043456  }
  0x17   : > { %428 = vmatprep.subr.mxu0 %v602_v0  ;;  %430 = vmatprep.mubr.msk.f32.mxu0 %vm603_vm0, %v602_v0  ;;  %s216_s11 = scalar_select %p215_p13, %s584_s18, 1  ;;  %v308_v3 = vld [vmem:[%s767_s3] sm:$0xff]  ;;  %vm223_vm2 = vcmask 31744  }
  0x18   : > { %507 = vset.pattern.permute.xlu0 %v604_v2  ;;  %s417_s12 = sshll.u32 %s214_s10, 1  ;;  %v221_v4 = vld [vmem:[%s765_s1] sm:$0xff]  ;;  %s416_s10 = sshll.u32 %s210_s9, 3 }
  0x19   : > { %304 = vperm.xlu0 %507, %v301_v1   ;;  %s218_s23 = sadd.s32 %s417_s12, %s216_s11  ;;  %s329_s11 = sadd.s32 %s584_s18, %s422_s13 }
  0x1a   : > { %s418_s24 = sshll.u32 %s218_s23, 2  ;;  %s423_s12 = sshll.u32 %s329_s11, 7 }
  0x1b   : > { %s220_s5 = scalar_lea.vmem %s764_s0, %s418_s24  ;;  %s212_s14 = scalar_lea.vmem [#allocation2], %s416_s10 }
  0x1c   : > { %v222_v5 = vld [vmem:[%s220_s5] sm:$0xf]  ;;  %s333_s23 = sshll.u32 %s212_s14, 4  ;;  %s331_s30 = scalar_lea.hbm %s768_s4, %s423_s12  ;;  %s334_s23 = int_to_ptr.vmem [resolvable:$true] %s333_s23 }
  0x1d   : > { %311 = vperm.xlu0 %507, %v308_v3   ;;  %429 = vmatpush3.msk.msra.mxu0 %vm227_vm1, %v222_v5  ;;  %s318_s5 = scalar_lea.sflag [#allocation3], %s210_s9  ;;  %s508_s6 = scalar_lea.vmem %s334_s23, 128 }
  0x1e   : > { %431 = vmatmul.mubr.msk.f32.vlgmr.msra.gmra.mxu0 %vm223_vm2, %v221_v4  ;;  %p509_p0 = scmp.ne.s32.totalorder %s334_s23, %s508_s6  ;;  %s605_s18 = smov [#allocation2]  }
  0x1f   : > { %s512_s19 = sshll.u32 %s605_s18, 4  ;;  %s513_s19 = int_to_ptr.vmem [resolvable:$false] %s512_s19 }
  0x20   : > { %p510_p1 = pnand %p509_p0, %p682_p3  ;;  %s514_s8 = scalar_lea.vmem %s513_s19, 256 }
  0x21   : > { %p515_p4 = scmp.lt.s32.totalorder %s334_s23, %s513_s19  ;;  %p516_p5 = scmp.lt.s32.totalorder %s514_s8, %s508_s6 }
  0x22   : > { %p511_p2 = pneg %p510_p1 }
  0x23   : > { %p517_p6 = por %p516_p5, %p515_p4 }
  0x25   : > { %p518_p7 = pnand %p517_p6, %p511_p2 }
  0x94   : > { %v305_v6 = vpop.permute.xlu0 %304 }
  0x98   : > { %v312_v9 = vpop.permute.xlu0 %311 }
  0xde   : > { %v297_v7 = vpop.f32.mrf.mxu0 }
  0xdf   : > { %v307_v8 = vmul.f32 %v305_v6, %v297_v7 }
  0xe0   : > { %v432_v10 = vpop.f32.mrf.mxu0 }
  0xe1   : > { %v314_v11 = vadd.f32 %v312_v9, %v307_v8 }
  0xe3   : > { %v315_v12 = vmax.f32 %v314_v11, 0.0 }
  0xe5   : > { %316 = vst [vmem:[%s212_s14] sm:$0xff] %v315_v12 }
  0xe6   : > { %521 = shalt.err (!%p518_p7)
}
  0xe7   : > { %s522_s10 = scalar_lea.hbm %s331_s30, 128  ;;  %s526_s11 = scalar_lea.hbm %s768_s4, 512 }
  0xe8   : > { %p523_p9 = scmp.ne.s32.totalorder %s331_s30, %s522_s10  ;;  %p527_p12 = scmp.lt.s32.totalorder %s331_s30, %s768_s4 }
  0xe9   : > { %p528_p13 = scmp.lt.s32.totalorder %s526_s11, %s522_s10 }
  0xea   : > { %p524_p10 = pnand %p523_p9, %p682_p3 }
  0xeb   : > { %p529_p0 = por %p528_p13, %p527_p12 }
  0xec   : > { %p525_p11 = pneg %p524_p10 }
  0xee   : > { %p530_p1 = pnand %p529_p0, %p525_p11 }
  0xf0   : > { %533 = shalt.err (!%p530_p1)
}
  0xf1   : > { %433 = dma.vmem_to_hbm [thread:$0]  (%p682_p3), %s334_s23, 128, %s331_s30, %s318_s5  }
  0xf2 PF: > { %p439_p2 = scmp.ge.s32.totalorder %s600_s22, 2  ;;  %s345_s24 = sand.u32 1, %s572_s15  }
  0xf3   : > { %s346_s27 = scalar_lea.sflag [#allocation3], %s345_s24 }
  0xf4   : > { %p436_p4 = pnand %p439_p2, %p691_p8 }
  0xf6   : > { %p437_p5 = pneg %p436_p4 }
  0xf8   : > { %567 = dma.done.wait (%p437_p5), %s346_s27, 128  }
  0xf9   : > { %569 = vsyncadd (%p437_p5), %s346_s27, 4294967168  ;;  %s17_s22 = sadd.s32 1, %s600_s22   ;;  %s771_s15 = smov %s576_s16 }
  0xfa   : > { %p14_p6 = scmp.ge.s32.totalorder %s17_s22, 6   ;;  %s772_s16 = smov %s580_s17 }
  0xfb   : > { %s773_s17 = smov %s700_s7  ;;  %s774_s18 = smov %s592_s20 }
  0xfc   : > { %s775_s19 = smov %s596_s21  ;;  %s776_s20 = smov %s779_s25 }
  0xfd   : > { %s777_s21 = smov %s783_s26  ;;  %16 = sbr.rel (!%p14_p6) target bundleno = 5 (0x5), region = 71 }
 0x102   :  { %351 = vsyncpa [#allocation3], 1 }
 0x103   :  { %353 = vsyncpa [#allocation3 + $0x1], 1 }

</bundles_post_ra>
